<compile_context>
chip_gen: v5e
topology: v5e:2x2
jax: 0.10.0
libtpu: 0.0.40
codegen_flags: <defaults>
</compile_context>

<pallas_src>
from functools import reduce

import jax
import jax.numpy as jnp
import numpy as np
from jax.experimental import pallas as pl
from jax.experimental.pallas import tpu as pltpu


# ---------------------------------------------------------------------------
# Rs bookkeeping (plain Python glue, mirrors SO3.normalizeRs + SortSphericalSignals)
# ---------------------------------------------------------------------------
def normalize_rs(Rs):
    out = []
    for r in Rs:
        if isinstance(r, int):
            mul, l, p = 1, r, 0
        elif len(r) == 2:
            (mul, l), p = r, 0
        else:
            mul, l, p = r
        p = 1 if p > 0 else (-1 if p < 0 else 0)
        if mul == 0:
            continue
        out.append((int(mul), int(l), int(p)))
    return out


def build_copy_plan(Rs_per_signal):
    """Static plan for the fused concat + sort.

    Returns:
      copies:    tuple of (signal_idx, src_offset_in_signal, dst_offset, size),
                 ordered by destination offset, tiling the full output feature
                 axis, with adjacent contiguous copies from the same signal
                 coalesced into one slab.
      sig_feats: feature width of each signal
      F_total:   total feature width
      Rs_out:    sorted Rs (same as the PyTorch module's Rs_out)
    """
    xs = []
    sig_feats = []
    j = 0
    for k, Rs in enumerate(Rs_per_signal):
        fk = 0
        for mul, l, p in Rs:
            d = mul * (2 * l + 1)
            # extra (k, fk) fields do not change the sort order (j is unique)
            xs.append((l, p, mul, j, d, k, fk))
            j += d
            fk += d
        sig_feats.append(fk)

    raw = []
    Rs_out = []
    i = 0
    for l, p, mul, _j, d, k, local in sorted(xs):
        Rs_out.append((mul, l, p))
        raw.append((k, local, i, d))
        i += d

    # Coalesce adjacent copies: same signal, contiguous src AND dst ranges.
    copies = []
    for k, src, dst, d in raw:
        if copies:
            pk, psrc, pdst, pd = copies[-1]
            if pk == k and psrc + pd == src and pdst + pd == dst:
                copies[-1] = (pk, psrc, pdst, pd + d)
                continue
        copies.append((k, src, dst, d))
    return tuple(copies), tuple(sig_feats), j, normalize_rs(Rs_out)


def build_sort_mixing_matrix(Rs):
    """Reference-only: the (F, F) permutation matrix built by SortSphericalSignals."""
    Rs = normalize_rs(Rs)
    xs = []
    j = 0
    for mul, l, p in Rs:
        d = mul * (2 * l + 1)
        xs.append((l, p, mul, j, d))
        j += d
    mix = np.zeros((j, j), dtype=np.float32)
    i = 0
    for l, p, mul, j0, d in sorted(xs):
        mix[i:i + d, j0:j0 + d] = np.eye(d, dtype=np.float32)
        i += d
    return mix


# ---------------------------------------------------------------------------
# Tile selection
# ---------------------------------------------------------------------------
def _round_up(x, m):
    return ((x + m - 1) // m) * m


def _sublane(itemsize):
    # f32 -> 8, bf16/f16 -> 16, int8/fp8 -> 32 sublane tile.
    return max(8, 32 // max(itemsize, 1))


def _vmem_budgets():
    """(per-step tile budget, vmem_limit_bytes) — generation-aware, safe fallback."""
    try:
        cap = int(pltpu.get_tpu_info().vmem_capacity_bytes)
    except Exception:
        cap = 0
    if cap >= (100 << 20):          # v5e / v6e: 128 MiB physical VMEM
        return 24 << 20, 64 << 20
    if cap > 0:                     # v7x: 64 MiB per TensorCore — stay conservative
        return 16 << 20, 48 << 20
    return 12 << 20, 32 << 20       # unknown generation: safe everywhere


def _choose_col_tile(A, max_lanes=2048):
    """Lane-dense (multiple-of-128) spatial tile; ragged boundary handled by grid."""
    if A <= 128:
        return A                    # full extent (allowed by the (8,128) rule)
    if A % 128 == 0:
        t = 128
        while t * 2 <= max_lanes and A % (t * 2) == 0:
            t *= 2
        return t
    # Non-128-multiple A: largest 128-multiple <= min(A, cap); last block masked.
    return min((A // 128) * 128, max_lanes)


def _choose_batch_tile(B, sig_feats, F_total, tA, in_itemsizes, out_itemsize, budget):
    """Sublane-padding-aware footprint: 2 (double-buffer) x (padded inputs + padded output)."""
    per_row = 0
    for fk, isz in zip(sig_feats, in_itemsizes):
        per_row += _round_up(fk, _sublane(isz)) * isz
    per_row += _round_up(F_total, _sublane(out_itemsize)) * out_itemsize
    per_row *= 2 * tA
    return max(1, min(B, budget // max(per_row, 1)))


# ---------------------------------------------------------------------------
# Pallas kernel: fused concat + feature-block permutation (pure copy)
# ---------------------------------------------------------------------------
def _make_sort_concat_kernel(copies):
    # `copies` tiles the full output feature axis (sorted by dst), so writing
    # each coalesced slab directly into its destination sublane range covers
    # every output element exactly once — no concat temp, no matmul.
    def kernel(*refs):
        x_refs = refs[:-1]
        o_ref = refs[-1]
        for sig, src, dst, d in copies:
            o_ref[:, dst:dst + d, :] = (
                x_refs[sig][:, src:src + d, :].astype(o_ref.dtype))
    return kernel


def concat_and_sort(signals, copies, sig_feats, F_total):
    """signals: list of [B, F_k, *spatial] arrays -> [B, F_total, *spatial]."""
    B = signals[0].shape[0]
    spatial = signals[0].shape[2:]
    for s, fk in zip(signals, sig_feats):
        assert s.shape[0] == B and s.shape[1] == fk and s.shape[2:] == spatial

    A = int(np.prod(spatial)) if spatial else 1
    out_dtype = jnp.result_type(*signals)
    out_itemsize = jnp.dtype(out_dtype).itemsize
    in_itemsizes = [jnp.dtype(s.dtype).itemsize for s in signals]

    # No wrapper-side astype (extra HBM pass); any promotion is done in-kernel.
    flats = [s.reshape(B, s.shape[1], A) for s in signals]

    budget, vmem_limit = _vmem_budgets()
    tA = _choose_col_tile(A)
    tB = _choose_batch_tile(B, sig_feats, F_total, tA,
                            in_itemsizes, out_itemsize, budget)

    # Keep both v7x TensorCores fed: at least 2 grid steps on a parallel axis.
    if pl.cdiv(B, tB) * pl.cdiv(A, tA) < 2:
        if B >= 2:
            tB = -(-B // 2)
        elif tA >= 256 and tA % 256 == 0:
            tA //= 2

    grid = (pl.cdiv(B, tB), pl.cdiv(A, tA))
    idx_map = lambda bi, ai: (bi, 0, ai)
    in_specs = [pl.BlockSpec((tB, fk, tA), idx_map) for fk in sig_feats]
    out_spec = pl.BlockSpec((tB, F_total, tA), idx_map)

    # Pure data movement: read every input element once, write every output once.
    bytes_accessed = (sum(B * fk * A * isz for fk, isz in zip(sig_feats, in_itemsizes))
                      + B * F_total * A * out_itemsize)

    out_flat = pl.pallas_call(
        _make_sort_concat_kernel(copies),
        out_shape=jax.ShapeDtypeStruct((B, F_total, A), out_dtype),
        grid=grid,
        in_specs=in_specs,
        out_specs=out_spec,
        compiler_params=pltpu.CompilerParams(
            dimension_semantics=("parallel", "parallel"),
            vmem_limit_bytes=vmem_limit,
        ),
        cost_estimate=pl.CostEstimate(
            flops=0, transcendentals=0, bytes_accessed=bytes_accessed),
    )(*flats)

    return out_flat.reshape((B, F_total) + spatial)


# ---------------------------------------------------------------------------
class ConcatenateSphericalSignals:
    def __init__(self, *Rs):
        Rs_per_signal = [normalize_rs(r) for r in Rs]
        (self._copies, self._sig_feats, self._F_total,
         self.Rs_out) = build_copy_plan(Rs_per_signal)
        # Reference-only permutation matrix (same as the PyTorch buffer); the
        # kernel itself never touches it.
        Rs_all = reduce(list.__add__, [list(r) for r in Rs_per_signal], [])
        self.mixing_matrix = build_sort_mixing_matrix(Rs_all)

    def __call__(self, *signals):
        assert len(signals) == len(self._sig_feats)
        return concat_and_sort(list(signals), self._copies, self._sig_feats,
                               self._F_total)


# ---------------------------------------------------------------------------
def _reference(module, signals):
    combined = np.concatenate([np.asarray(s) for s in signals], axis=1)
    B = combined.shape[0]
    F = combined.shape[1]
    flat = combined.reshape(B, F, -1)
    ref = np.einsum("ij,zja->zia", module.mixing_matrix, flat)
    return ref.reshape(combined.shape)


if __name__ == "__main__":
    # Rs1: 2x l=0 (dim 2) + 1x l=1 (dim 3)  -> 5 features
    # Rs2: 1x l=2 (dim 5) + 1x l=0 (dim 1)  -> 6 features
    Rs1 = [(2, 0), (1, 1)]
    Rs2 = [(1, 2), (1, 0)]
    F1 = sum(mul * (2 * l + 1) for mul, l in Rs1)  # 5
    F2 = sum(mul * (2 * l + 1) for mul, l in Rs2)  # 6

    module = ConcatenateSphericalSignals(Rs1, Rs2)
    key = jax.random.PRNGKey(0)

    # --- Test 1: lane-dense spatial (16x16 = 256, multiple of 128) -----------
    B, H, W = 2, 16, 16
    k1, k2, k3, k4 = jax.random.split(key, 4)
    x1 = jax.random.normal(k1, (B, F1, H, W), dtype=jnp.float32)
    x2 = jax.random.normal(k2, (B, F2, H, W), dtype=jnp.float32)
    out = jax.block_until_ready(module(x1, x2))
    assert out.shape == (B, F1 + F2, H, W)
    assert out.dtype == jnp.float32
    np.testing.assert_allclose(np.asarray(out), _reference(module, [x1, x2]),
                               rtol=1e-6, atol=1e-6)

    # --- Test 2: ragged spatial (10x15 = 150, not a multiple of 128) ---------
    Hb, Wb = 10, 15
    y1 = jax.random.normal(k3, (B, F1, Hb, Wb), dtype=jnp.float32)
    y2 = jax.random.normal(k4, (B, F2, Hb, Wb), dtype=jnp.float32)
    out2 = jax.block_until_ready(module(y1, y2))
    assert out2.shape == (B, F1 + F2, Hb, Wb)
    np.testing.assert_allclose(np.asarray(out2), _reference(module, [y1, y2]),
                               rtol=1e-6, atol=1e-6)

    print("KERNEL_OK")
</pallas_src>

<mosaic_0001>
module attributes {stable_mosaic.version = 11 : i64} {
  func.func @kernel(%arg0: i32, %arg1: i32, %arg2: memref<1x5x256xf32, #tpu.memory_space<vmem>>, %arg3: memref<1x6x256xf32, #tpu.memory_space<vmem>>, %arg4: memref<1x11x256xf32, #tpu.memory_space<vmem>>) attributes {dimension_semantics = [#tpu.dimension_semantics<parallel>, #tpu.dimension_semantics<parallel>], iteration_bounds = array<i64: 2, 1>, scalar_prefetch = 0 : i64, scratch_operands = 0 : i64, tpu.core_type = #tpu.core_type<tc>, window_params = [{transform_indices = @transform_0, window_bounds = array<i64: 1, 5, 256>}, {transform_indices = @transform_1, window_bounds = array<i64: 1, 6, 256>}, {transform_indices = @transform_2, window_bounds = array<i64: 1, 11, 256>}]} {
    %c0 = arith.constant 0 : index
    %c5 = arith.constant 5 : index
    %c0_0 = arith.constant 0 : index
    %0 = vector.load %arg3[%c0, %c5, %c0_0] : memref<1x6x256xf32, #tpu.memory_space<vmem>>, vector<1x1x256xf32>
    %c0_1 = arith.constant 0 : index
    %c0_2 = arith.constant 0 : index
    %c0_3 = arith.constant 0 : index
    %1 = vector.load %arg4[%c0_1, %c0_2, %c0_3] : memref<1x11x256xf32, #tpu.memory_space<vmem>>, vector<1x1x256xf32>
    tpu.vector_store %arg4[%c0_1, %c0_2, %c0_3], %0 {strides = array<i32>} : memref<1x11x256xf32, #tpu.memory_space<vmem>>, vector<1x1x256xf32>,
    %c0_4 = arith.constant 0 : index
    %c0_5 = arith.constant 0 : index
    %c0_6 = arith.constant 0 : index
    %2 = vector.load %arg2[%c0_4, %c0_5, %c0_6] : memref<1x5x256xf32, #tpu.memory_space<vmem>>, vector<1x5x256xf32>
    %c0_7 = arith.constant 0 : index
    %c1 = arith.constant 1 : index
    %c0_8 = arith.constant 0 : index
    %3 = vector.load %arg4[%c0_7, %c1, %c0_8] : memref<1x11x256xf32, #tpu.memory_space<vmem>>, vector<1x5x256xf32>
    tpu.vector_store %arg4[%c0_7, %c1, %c0_8], %2 {strides = array<i32>} : memref<1x11x256xf32, #tpu.memory_space<vmem>>, vector<1x5x256xf32>,
    %c0_9 = arith.constant 0 : index
    %c0_10 = arith.constant 0 : index
    %c0_11 = arith.constant 0 : index
    %4 = vector.load %arg3[%c0_9, %c0_10, %c0_11] : memref<1x6x256xf32, #tpu.memory_space<vmem>>, vector<1x5x256xf32>
    %c0_12 = arith.constant 0 : index
    %c6 = arith.constant 6 : index
    %c0_13 = arith.constant 0 : index
    %5 = vector.load %arg4[%c0_12, %c6, %c0_13] : memref<1x11x256xf32, #tpu.memory_space<vmem>>, vector<1x5x256xf32>
    tpu.vector_store %arg4[%c0_12, %c6, %c0_13], %4 {strides = array<i32>} : memref<1x11x256xf32, #tpu.memory_space<vmem>>, vector<1x5x256xf32>,
    return
  }
  func.func @transform_0(%arg0: i32, %arg1: i32) -> (i32, i32, i32) {
    %c0_i32 = arith.constant 0 : i32
    %c0_i32_0 = arith.constant 0 : i32
    return %arg0, %c0_i32, %arg1 : i32, i32, i32
  }
  func.func @transform_1(%arg0: i32, %arg1: i32) -> (i32, i32, i32) {
    %c0_i32 = arith.constant 0 : i32
    %c0_i32_0 = arith.constant 0 : i32
    return %arg0, %c0_i32, %arg1 : i32, i32, i32
  }
  func.func @transform_2(%arg0: i32, %arg1: i32) -> (i32, i32, i32) {
    %c0_i32 = arith.constant 0 : i32
    %c0_i32_0 = arith.constant 0 : i32
    return %arg0, %c0_i32, %arg1 : i32, i32, i32
  }
}

</mosaic_0001>

<bundles_post_ra>
// kernel: tpu_custom_call.1
= control target key start
LH: loop header
LB: loop body
LE: loop exit
PB: predicated region body
PF: predicated region fallthrough
CT: control target
= control target key end

     0   :  { %s434_s9 = smov 0   ;;  %s436_s10 = smov 0   ;;  %s470_s0 = inlined_call_operand.vmem [shape: f32[2,5,256], index: 0, kind: input, shape index: {}]   ;;  %s471_s1 = inlined_call_operand.vmem [shape: f32[2,6,256], index: 1, kind: input, shape index: {}]   ;;  %s472_s2 = inlined_call_operand.vmem [shape: f32[2,11,256], index: 2, kind: output, shape index: {}]  }
   0x1   :  { %s438_s11 = smov 0  }
   0x2 LB: > { %s24_s12 = sadd.s32 1, %s413_s10  ;;  %p358_p0 = scmp.ge.s32.totalorder %s417_s11, 1  ;;  %s417_s11 = sphi %s438_s11, %s12_s11   ;;  %s413_s10 = sphi %s436_s10, %s474_s10   ;;  %s409_s9 = sphi %s434_s9, %s473_s9  }
   0x3   : > { %p26_p1 = scmp.ge.s32.totalorder %s24_s12, 2  ;;  %p150_p2 = scmp.lt.s32.totalorder %s417_s11, 3 }
   0x5   : > { %s476_s12 = smov (%p26_p1, %s24_s12), 0  ;;  %p151_p3 = pnand %p358_p0, %p150_p2 }
   0x6   : > { %p190_p4 = scmp.lt.s32.totalorder (!%p151_p3), %s409_s9, 1 }
   0x7   : > { %154 = sbr.rel (%p151_p3) target bundleno = 24 (0x18), region = 28 }
   0xc   : > { %v221_v0 = vlaneseq  ;;  %s478_s9 = smov (!%p190_p4, %s409_s9), 1 }
   0xd   : > { %s368_s13 = sshll.u32 %s478_s9, 4  ;;  %s370_s14 = sshll.u32 %s478_s9, 5 }
   0xe   : > { %vm223_vm0 = vcmp.lt.s32.totalorder %v221_v0, 256  ;;  %s207_s17 = scalar_lea.vmem %s471_s1, %s368_s13  ;;  %s217_s20 = scalar_lea.vmem %s472_s2, %s370_s14 }
   0xf   : > { %v365_v1 = vld [vmem:[%s207_s17 + $0x5] ss:$8 sm:$0x3]  ;;  %s197_s23 = scalar_lea.vmem %s470_s0, %s368_s13  ;;  %v237_v2 = vld [vmem:[%s207_s17] sm:$0x1f] }
  0x10   : > { %225 = vst.msk [vmem:[%s217_s20] ss:$8 sm:$0x3] %vm223_vm0, %v365_v1  ;;  %v227_v3 = vld [vmem:[%s197_s23] sm:$0x1f]  ;;  %v241_v4 = vrot.slane %v237_v2, 2 }
  0x11   : > { %v231_v5 = vrot.slane %v227_v3, 7  ;;  %v228_v6 = vld [vmem:[%s197_s23 + $0x8] sm:$0x1f] }
  0x12   : > { %v238_v7 = vld [vmem:[%s207_s17 + $0x8] sm:$0x1f]  ;;  %v232_v8 = vrot.slane %v228_v6, 7  ;;  %245 = vst [vmem:[%s217_s20] sm:$0xc0] %v241_v4 }
  0x13   : > { %v242_v9 = vrot.slane %v238_v7, 2  ;;  %235 = vst [vmem:[%s217_s20] sm:$0x3e] %v231_v5 }
  0x14   : > { %236 = vst [vmem:[%s217_s20 + $0x8] sm:$0x3e] %v232_v8 }
  0x15   : > { %247 = vst [vmem:[%s217_s20 + $0x10] sm:$0x7] %v241_v4 }
  0x16   : > { %246 = vst [vmem:[%s217_s20 + $0x8] sm:$0xc0] %v242_v9 }
  0x17   : > { %248 = vst [vmem:[%s217_s20 + $0x18] sm:$0x7] %v242_v9 }
  0x18 PF: > { %s12_s11 = sadd.s32 1, %s417_s11   ;;  %s473_s9 = smov %s413_s10 }
  0x19   : > { %p9_p5 = scmp.ge.s32.totalorder %s12_s11, 4   ;;  %s474_s10 = smov %s476_s12 }
  0x1b   :  { %11 = sbr.rel (!%p9_p5) target bundleno = 2 (0x2), region = 62 }

</bundles_post_ra>
